<compile_context>
chip_gen: v5e
topology: v5e:2x2
jax: 0.10.0
libtpu: 0.0.40
codegen_flags: <defaults>
</compile_context>

<pallas_src>
import functools
import math

import jax
import jax.numpy as jnp
from jax import lax
from jax.experimental import pallas as pl
from jax.experimental.pallas import tpu as pltpu

K = 2.0
NOISE = 0.1
_LANE_W = 512                 # wide, multiple of 128 -> unmasked full vst
_MAX_TILE_ROWS = 1024         # (1024, 512) f32 tile = 2 MiB per buffer


def _mix32(v):
    """splitmix32-style avalanche mix on uint32 vectors (pure VPU int ops)."""
    v = (v ^ (v >> jnp.uint32(16))) * jnp.uint32(0x7FEB352D)
    v = (v ^ (v >> jnp.uint32(15))) * jnp.uint32(0x846CA68B)
    v = v ^ (v >> jnp.uint32(16))
    return v


def _u16_to_unit(bits16):
    """uint32 values in [0, 65536) -> float32 uniform in [0, 1)."""
    return bits16.astype(jnp.int32).astype(jnp.float32) * jnp.float32(1.0 / 65536.0)


def _int_parameter_kernel(seed_ref, x_ref, o_ref, *, k, noise, tile_rows):
    shape = x_ref.shape  # (tile_rows, _LANE_W)

    # Globally-unique per-element counter (tile offset + row*W + lane).
    tile_base = (pl.program_id(0) * (tile_rows * _LANE_W)).astype(jnp.uint32)
    row_iota = lax.broadcasted_iota(jnp.uint32, shape, 0)
    col_iota = lax.broadcasted_iota(jnp.uint32, shape, 1)
    idx = tile_base + row_iota * jnp.uint32(_LANE_W) + col_iota

    seed_u = seed_ref[0].astype(jnp.uint32)
    golden = jnp.uint32(0x9E3779B9)

    # Two independent 32-bit words per element -> four 16-bit uniforms.
    w1 = _mix32(idx ^ (seed_u * golden))
    w2 = _mix32(w1 + golden)

    mask16 = jnp.uint32(0xFFFF)
    u0 = _u16_to_unit(w1 & mask16)
    u1 = _u16_to_unit(w1 >> jnp.uint32(16))
    u2 = _u16_to_unit(w2 & mask16)
    u3 = _u16_to_unit(w2 >> jnp.uint32(16))

    # Irwin-Hall(4) CLT approximation of N(0, 1):
    #   sum of 4 U(0,1) has mean 2, var 1/3  ->  (sum - 2) * sqrt(3) ~ N(0,1).
    gauss = (u0 + u1 + u2 + u3 - jnp.float32(2.0)) * jnp.float32(math.sqrt(3.0))

    x = x_ref[...].astype(jnp.float32)
    v = jnp.float32(k) * (x + gauss * jnp.float32(noise))
    v = jnp.clip(v, jnp.float32(-k - 0.49), jnp.float32(k + 0.49))
    # jnp.round matches torch.round (round-half-to-even).
    o_ref[...] = jnp.round(v).astype(o_ref.dtype)


def int_parameter_forward(x, seed, *, k=K, noise=NOISE):
    """Pallas implementation of IntParameter.forward.

    x    : float array of any shape (e.g. NCHW).
    seed : python int / int32 scalar seeding the in-kernel hash PRNG.
    """
    orig_shape = x.shape
    orig_dtype = x.dtype
    flat = x.reshape(-1)
    n = flat.shape[0]

    # Pad only up to the lane boundary (and, for large inputs, to a whole
    # number of tiles so the grid divides evenly).
    rows = -(-n // _LANE_W)  # ceil
    if rows <= _MAX_TILE_ROWS:
        tile_rows = rows
        num_tiles = 1
    else:
        tile_rows = _MAX_TILE_ROWS
        num_tiles = -(-rows // tile_rows)
    total = num_tiles * tile_rows * _LANE_W
    if total != n:
        flat = jnp.pad(flat, (0, total - n))
    x2d = flat.reshape(num_tiles * tile_rows, _LANE_W)

    seed_arr = jnp.asarray([seed], dtype=jnp.int32)

    kernel = functools.partial(
        _int_parameter_kernel, k=k, noise=noise, tile_rows=tile_rows)

    out2d = pl.pallas_call(
        kernel,
        out_shape=jax.ShapeDtypeStruct(
            (num_tiles * tile_rows, _LANE_W), orig_dtype),
        grid=(num_tiles,),
        in_specs=[
            pl.BlockSpec(memory_space=pltpu.MemorySpace.SMEM),        # seed scalar
            pl.BlockSpec((tile_rows, _LANE_W), lambda i: (i, 0)),     # data tile
        ],
        out_specs=pl.BlockSpec((tile_rows, _LANE_W), lambda i: (i, 0)),
        compiler_params=pltpu.CompilerParams(
            dimension_semantics=("parallel",)),
    )(seed_arr, x2d)

    return out2d.reshape(-1)[:n].reshape(orig_shape)


if __name__ == "__main__":
    key = jax.random.PRNGKey(0)
    # Small NCHW input consistent with a GAN feature map.
    x = jax.random.normal(key, (2, 4, 16, 16), dtype=jnp.float32)

    out = int_parameter_forward(x, seed=0)
    out = jax.block_until_ready(out)

    # Sanity checks: same shape/dtype, integer-valued, within [-k, k].
    assert out.shape == x.shape and out.dtype == x.dtype
    assert bool(jnp.all(out == jnp.round(out)))
    assert bool(jnp.all(jnp.abs(out) <= K))

    # Noise-free reference: with |noise * gauss| small, most elements should
    # match round(clamp(k*x)) — check a loose agreement bound.
    ref = jnp.round(jnp.clip(K * x, -K - 0.49, K + 0.49))
    agree = jnp.mean((out == ref).astype(jnp.float32))
    assert bool(agree > 0.5)

    print("KERNEL_OK")
</pallas_src>

<mosaic_0001>
module attributes {stable_mosaic.version = 11 : i64} {
  func.func @_int_parameter_kernel(%arg0: i32, %arg1: memref<1xi32, #tpu.memory_space<smem>>, %arg2: memref<4x512xf32, #tpu.memory_space<vmem>>, %arg3: memref<4x512xf32, #tpu.memory_space<vmem>>) attributes {dimension_semantics = [#tpu.dimension_semantics<parallel>], iteration_bounds = array<i64: 1>, scalar_prefetch = 0 : i64, scratch_operands = 0 : i64, tpu.core_type = #tpu.core_type<tc>, window_params = [{transform_indices = @transform_0, window_bounds = array<i64: 1>}, {transform_indices = @transform_1, window_bounds = array<i64: 4, 512>}, {transform_indices = @transform_2, window_bounds = array<i64: 4, 512>}]} {
    %c2048_i32 = arith.constant 2048 : i32
    %0 = arith.muli %arg0, %c2048_i32 : i32
    %1 = tpu.iota {dimensions = array<i32: 0>} : vector<4x512xi32>
    %2 = tpu.iota {dimensions = array<i32: 1>} : vector<4x512xi32>
    %c512_i32 = arith.constant 512 : i32
    %3 = vector.broadcast %c512_i32 : i32 to vector<4x512xi32>
    %4 = arith.muli %1, %3 : vector<4x512xi32>
    %5 = vector.broadcast %0 : i32 to vector<4x512xi32>
    %6 = arith.addi %5, %4 : vector<4x512xi32>
    %7 = arith.addi %6, %2 : vector<4x512xi32>
    %c0 = arith.constant 0 : index
    %8 = memref.load %arg1[%c0] : memref<1xi32, #tpu.memory_space<smem>>
    %c-1640531527_i32 = arith.constant -1640531527 : i32
    %9 = arith.muli %8, %c-1640531527_i32 : i32
    %10 = vector.broadcast %9 : i32 to vector<4x512xi32>
    %11 = arith.xori %7, %10 : vector<4x512xi32>
    %c16_i32 = arith.constant 16 : i32
    %12 = vector.broadcast %c16_i32 : i32 to vector<4x512xi32>
    %13 = arith.shrui %11, %12 : vector<4x512xi32>
    %14 = arith.xori %11, %13 : vector<4x512xi32>
    %c2146121005_i32 = arith.constant 2146121005 : i32
    %15 = vector.broadcast %c2146121005_i32 : i32 to vector<4x512xi32>
    %16 = arith.muli %14, %15 : vector<4x512xi32>
    %c15_i32 = arith.constant 15 : i32
    %17 = vector.broadcast %c15_i32 : i32 to vector<4x512xi32>
    %18 = arith.shrui %16, %17 : vector<4x512xi32>
    %19 = arith.xori %16, %18 : vector<4x512xi32>
    %c-2073254261_i32 = arith.constant -2073254261 : i32
    %20 = vector.broadcast %c-2073254261_i32 : i32 to vector<4x512xi32>
    %21 = arith.muli %19, %20 : vector<4x512xi32>
    %c16_i32_0 = arith.constant 16 : i32
    %22 = vector.broadcast %c16_i32_0 : i32 to vector<4x512xi32>
    %23 = arith.shrui %21, %22 : vector<4x512xi32>
    %24 = arith.xori %21, %23 : vector<4x512xi32>
    %c-1640531527_i32_1 = arith.constant -1640531527 : i32
    %25 = vector.broadcast %c-1640531527_i32_1 : i32 to vector<4x512xi32>
    %26 = arith.addi %24, %25 : vector<4x512xi32>
    %c16_i32_2 = arith.constant 16 : i32
    %27 = vector.broadcast %c16_i32_2 : i32 to vector<4x512xi32>
    %28 = arith.shrui %26, %27 : vector<4x512xi32>
    %29 = arith.xori %26, %28 : vector<4x512xi32>
    %c2146121005_i32_3 = arith.constant 2146121005 : i32
    %30 = vector.broadcast %c2146121005_i32_3 : i32 to vector<4x512xi32>
    %31 = arith.muli %29, %30 : vector<4x512xi32>
    %c15_i32_4 = arith.constant 15 : i32
    %32 = vector.broadcast %c15_i32_4 : i32 to vector<4x512xi32>
    %33 = arith.shrui %31, %32 : vector<4x512xi32>
    %34 = arith.xori %31, %33 : vector<4x512xi32>
    %c-2073254261_i32_5 = arith.constant -2073254261 : i32
    %35 = vector.broadcast %c-2073254261_i32_5 : i32 to vector<4x512xi32>
    %36 = arith.muli %34, %35 : vector<4x512xi32>
    %c16_i32_6 = arith.constant 16 : i32
    %37 = vector.broadcast %c16_i32_6 : i32 to vector<4x512xi32>
    %38 = arith.shrui %36, %37 : vector<4x512xi32>
    %39 = arith.xori %36, %38 : vector<4x512xi32>
    %c65535_i32 = arith.constant 65535 : i32
    %40 = vector.broadcast %c65535_i32 : i32 to vector<4x512xi32>
    %41 = arith.andi %24, %40 : vector<4x512xi32>
    %42 = arith.sitofp %41 : vector<4x512xi32> to vector<4x512xf32>
    %cst = arith.constant 1.52587891E-5 : f32
    %43 = vector.broadcast %cst : f32 to vector<4x512xf32>
    %44 = arith.mulf %42, %43 : vector<4x512xf32>
    %c16_i32_7 = arith.constant 16 : i32
    %45 = vector.broadcast %c16_i32_7 : i32 to vector<4x512xi32>
    %46 = arith.shrui %24, %45 : vector<4x512xi32>
    %47 = arith.sitofp %46 : vector<4x512xi32> to vector<4x512xf32>
    %cst_8 = arith.constant 1.52587891E-5 : f32
    %48 = vector.broadcast %cst_8 : f32 to vector<4x512xf32>
    %49 = arith.mulf %47, %48 : vector<4x512xf32>
    %c65535_i32_9 = arith.constant 65535 : i32
    %50 = vector.broadcast %c65535_i32_9 : i32 to vector<4x512xi32>
    %51 = arith.andi %39, %50 : vector<4x512xi32>
    %52 = arith.sitofp %51 : vector<4x512xi32> to vector<4x512xf32>
    %cst_10 = arith.constant 1.52587891E-5 : f32
    %53 = vector.broadcast %cst_10 : f32 to vector<4x512xf32>
    %54 = arith.mulf %52, %53 : vector<4x512xf32>
    %c16_i32_11 = arith.constant 16 : i32
    %55 = vector.broadcast %c16_i32_11 : i32 to vector<4x512xi32>
    %56 = arith.shrui %39, %55 : vector<4x512xi32>
    %57 = arith.sitofp %56 : vector<4x512xi32> to vector<4x512xf32>
    %cst_12 = arith.constant 1.52587891E-5 : f32
    %58 = vector.broadcast %cst_12 : f32 to vector<4x512xf32>
    %59 = arith.mulf %57, %58 : vector<4x512xf32>
    %60 = arith.addf %44, %49 : vector<4x512xf32>
    %61 = arith.addf %60, %54 : vector<4x512xf32>
    %62 = arith.addf %61, %59 : vector<4x512xf32>
    %cst_13 = arith.constant 2.000000e+00 : f32
    %63 = vector.broadcast %cst_13 : f32 to vector<4x512xf32>
    %64 = arith.subf %62, %63 : vector<4x512xf32>
    %cst_14 = arith.constant 1.73205078 : f32
    %65 = vector.broadcast %cst_14 : f32 to vector<4x512xf32>
    %66 = arith.mulf %64, %65 : vector<4x512xf32>
    %c0_15 = arith.constant 0 : index
    %c0_16 = arith.constant 0 : index
    %67 = vector.load %arg2[%c0_15, %c0_16] : memref<4x512xf32, #tpu.memory_space<vmem>>, vector<4x512xf32>
    %cst_17 = arith.constant 1.000000e-01 : f32
    %68 = vector.broadcast %cst_17 : f32 to vector<4x512xf32>
    %69 = arith.mulf %66, %68 : vector<4x512xf32>
    %70 = arith.addf %67, %69 : vector<4x512xf32>
    %cst_18 = arith.constant 2.000000e+00 : f32
    %71 = vector.broadcast %cst_18 : f32 to vector<4x512xf32>
    %72 = arith.mulf %71, %70 : vector<4x512xf32>
    %cst_19 = arith.constant -2.490000e+00 : f32
    %cst_20 = arith.constant 2.490000e+00 : f32
    %73 = vector.broadcast %cst_19 : f32 to vector<4x512xf32>
    %74 = arith.maximumf %73, %72 : vector<4x512xf32>
    %75 = vector.broadcast %cst_20 : f32 to vector<4x512xf32>
    %76 = arith.minimumf %75, %74 : vector<4x512xf32>
    %77 = math.roundeven %76 : vector<4x512xf32>
    %c0_21 = arith.constant 0 : index
    %c0_22 = arith.constant 0 : index
    %78 = vector.load %arg3[%c0_21, %c0_22] : memref<4x512xf32, #tpu.memory_space<vmem>>, vector<4x512xf32>
    tpu.vector_store %arg3[%c0_21, %c0_22], %77 {strides = array<i32>} : memref<4x512xf32, #tpu.memory_space<vmem>>, vector<4x512xf32>,
    return
  }
  func.func @transform_0(%arg0: i32) -> i32 {
    %c0_i32 = arith.constant 0 : i32
    %c0_i32_0 = arith.constant 0 : i32
    return %c0_i32 : i32
  }
  func.func @transform_1(%arg0: i32) -> (i32, i32) {
    %c0_i32 = arith.constant 0 : i32
    %c0_i32_0 = arith.constant 0 : i32
    return %arg0, %c0_i32 : i32, i32
  }
  func.func @transform_2(%arg0: i32) -> (i32, i32) {
    %c0_i32 = arith.constant 0 : i32
    %c0_i32_0 = arith.constant 0 : i32
    return %arg0, %c0_i32 : i32, i32
  }
}

</mosaic_0001>

<bundles_post_ra>
// kernel: tpu_custom_call.1
= control target key start
LH: loop header
LB: loop body
LE: loop exit
PB: predicated region body
PF: predicated region fallthrough
CT: control target
= control target key end

     0   :  { %8 = vsyncpa [#allocation4], 0  ;;  %s333_s0 = inlined_call_operand.<no memory space> [shape: s32[1], index: 0, kind: input, shape index: {}]   ;;  %s334_s1 = inlined_call_operand.hbm [shape: f32[4,512], index: 1, kind: input, shape index: {}]   ;;  %s335_s2 = inlined_call_operand.hbm [shape: f32[4,512], index: 2, kind: output, shape index: {}]  }
   0x1   :  { %9 = vsyncpa [#allocation5], 0  ;;  %s17_s11 = sshll.u32 %s334_s1, 4  ;;  %s307_s12 = smov [#allocation3]   ;;  %s18_s11 = int_to_ptr.hbm [resolvable:$true] %s17_s11 }
   0x2   :  { %s19_s13 = sshll.u32 %s307_s12, 4  ;;  %s20_s13 = int_to_ptr.vmem [resolvable:$true] %s19_s13 }
   0x3   :  { %22 = dma.hbm_to_vmem [thread:$0]  %s18_s11, 256, %s20_s13, [#allocation4]  }
   0x4   :  { %303 = dma.done.wait [#allocation4], 256  }
   0x5   :  { %304 = vsyncadd [#allocation4], 4294967040  ;;  %v28_v0 = vlaneseq  ;;  %s43_s16 = smul.u32 2654435769, %s333_s0  ;;  %vm197_vm0 = vcmask 1043456   ;;  %s308_s0 = smov [#allocation6]  }
   0x6   :  { %s219_s1 = sshll.u32 %s308_s0, 4  ;;  %s221_s19 = sshll.u32 %s335_s2, 4  ;;  %s220_s1 = int_to_ptr.vmem [resolvable:$true] %s219_s1  ;;  %s222_s19 = int_to_ptr.hbm [resolvable:$true] %s221_s19 }
   0x7   :  { %v29_v1 = vshrl.u32 %v28_v0, 7  ;;  %v31_v2 = vand.u32 127, %v28_v0  ;;  %v44_v7 = vstv %s43_s16 }
   0x9   :  { %v32_v3 = vadd.s32 128, %v31_v2  ;;  %v35_v4 = vmul.u32 512, %v29_v1  ;;  %v33_v5 = vadd.s32 256, %v31_v2  ;;  %v34_v6 = vadd.s32 384, %v31_v2 }
   0xb   :  { %v38_v8 = vadd.s32 %v35_v4, %v31_v2  ;;  %v39_v9 = vadd.s32 %v35_v4, %v32_v3  ;;  %v40_v10 = vadd.s32 %v35_v4, %v33_v5  ;;  %v41_v11 = vadd.s32 %v35_v4, %v34_v6 }
   0xd   :  { %v45_v12 = vxor.u32 %v44_v7, %v38_v8  ;;  %v46_v13 = vxor.u32 %v44_v7, %v39_v9  ;;  %v47_v14 = vxor.u32 %v44_v7, %v40_v10  ;;  %v48_v15 = vxor.u32 %v44_v7, %v41_v11 }
   0xf   :  { %v49_v16 = vshrl.u32 %v45_v12, 16  ;;  %v50_v17 = vshrl.u32 %v46_v13, 16  ;;  %v51_v18 = vshrl.u32 %v47_v14, 16  ;;  %v52_v19 = vshrl.u32 %v48_v15, 16 }
  0x11   :  { %v53_v20 = vxor.u32 %v49_v16, %v45_v12  ;;  %v54_v21 = vxor.u32 %v50_v17, %v46_v13  ;;  %v55_v22 = vxor.u32 %v51_v18, %v47_v14  ;;  %v56_v23 = vxor.u32 %v52_v19, %v48_v15 }
  0x13   :  { %v57_v24 = vmul.u32 2146121005, %v53_v20  ;;  %v58_v25 = vmul.u32 2146121005, %v54_v21  ;;  %v59_v26 = vmul.u32 2146121005, %v55_v22 }
  0x14   :  { %v60_v27 = vmul.u32 2146121005, %v56_v23 }
  0x15   :  { %v61_v28 = vshrl.u32 %v57_v24, 15  ;;  %v62_v29 = vshrl.u32 %v58_v25, 15  ;;  %v63_v30 = vshrl.u32 %v59_v26, 15 }
  0x16   :  { %v64_v31 = vshrl.u32 %v60_v27, 15 }
  0x17   :  { %v65_v32 = vxor.u32 %v61_v28, %v57_v24  ;;  %v66_v33 = vxor.u32 %v62_v29, %v58_v25  ;;  %v67_v34 = vxor.u32 %v63_v30, %v59_v26 }
  0x18   :  { %v68_v35 = vxor.u32 %v64_v31, %v60_v27 }
  0x19   :  { %v69_v36 = vmul.u32 2221713035, %v65_v32  ;;  %v70_v37 = vmul.u32 2221713035, %v66_v33  ;;  %v71_v38 = vmul.u32 2221713035, %v67_v34 }
  0x1a   :  { %v72_v39 = vmul.u32 2221713035, %v68_v35 }
  0x1b   :  { %v73_v40 = vshrl.u32 %v69_v36, 16  ;;  %v74_v41 = vshrl.u32 %v70_v37, 16  ;;  %v75_v42 = vshrl.u32 %v71_v38, 16 }
  0x1c   :  { %v76_v43 = vshrl.u32 %v72_v39, 16 }
  0x1d   :  { %v77_v44 = vxor.u32 %v73_v40, %v69_v36  ;;  %v78_v45 = vxor.u32 %v74_v41, %v70_v37  ;;  %v79_v46 = vxor.u32 %v75_v42, %v71_v38 }
  0x1e   :  { %v80_v47 = vxor.u32 %v76_v43, %v72_v39 }
  0x1f   :  { %v81_v48 = vadd.s32 2654435769, %v77_v44  ;;  %v82_v49 = vadd.s32 2654435769, %v78_v45  ;;  %v117_v50 = vand.u32 65535, %v77_v44  ;;  %v118_v51 = vand.u32 65535, %v78_v45 }
  0x20   :  { %v83_v52 = vadd.s32 2654435769, %v79_v46  ;;  %v84_v53 = vadd.s32 2654435769, %v80_v47  ;;  %v129_v56 = vshrl.u32 %v77_v44, 16  ;;  %v130_v57 = vshrl.u32 %v78_v45, 16 }
  0x21   :  { %v85_v54 = vshrl.u32 %v81_v48, 16  ;;  %v86_v55 = vshrl.u32 %v82_v49, 16  ;;  %v121_v61 = vcvt.s32.f32 %v117_v50  ;;  %v122_v62 = vcvt.s32.f32 %v118_v51 }
  0x22   :  { %v87_v58 = vshrl.u32 %v83_v52, 16  ;;  %v88_v63 = vshrl.u32 %v84_v53, 16  ;;  %v119_v3 = vand.u32 65535, %v79_v46  ;;  %v120_v4 = vand.u32 65535, %v80_v47 }
  0x23   :  { %v89_v59 = vxor.u32 %v85_v54, %v81_v48  ;;  %v90_v60 = vxor.u32 %v86_v55, %v82_v49  ;;  %v133_v5 = vcvt.s32.f32 %v129_v56  ;;  %v134_v6 = vcvt.s32.f32 %v130_v57 }
  0x24   :  { %v91_v0 = vxor.u32 %v87_v58, %v83_v52  ;;  %v92_v7 = vxor.u32 %v88_v63, %v84_v53  ;;  %v125_v11 = vmul.f32 1.5258789e-05, %v121_v61  ;;  %v123_v12 = vcvt.s32.f32 %v119_v3 }
  0x25   :  { %v93_v1 = vmul.u32 2146121005, %v89_v59  ;;  %v94_v2 = vmul.u32 2146121005, %v90_v60  ;;  %v131_v15 = vshrl.u32 %v79_v46, 16  ;;  %v132_v16 = vshrl.u32 %v80_v47, 16 }
  0x26   :  { %v95_v8 = vmul.u32 2146121005, %v91_v0  ;;  %v96_v13 = vmul.u32 2146121005, %v92_v7  ;;  %v126_v19 = vmul.f32 1.5258789e-05, %v122_v62  ;;  %v124_v20 = vcvt.s32.f32 %v120_v4 }
  0x27   :  { %v97_v9 = vshrl.u32 %v93_v1, 15  ;;  %v98_v10 = vshrl.u32 %v94_v2, 15  ;;  %v135_v23 = vcvt.s32.f32 %v131_v15  ;;  %v136_v24 = vcvt.s32.f32 %v132_v16 }
  0x28   :  { %v99_v14 = vshrl.u32 %v95_v8, 15  ;;  %v100_v21 = vshrl.u32 %v96_v13, 15  ;;  %v137_v27 = vmul.f32 1.5258789e-05, %v133_v5  ;;  %v138_v28 = vmul.f32 1.5258789e-05, %v134_v6 }
  0x29   :  { %v101_v17 = vxor.u32 %v97_v9, %v93_v1  ;;  %v102_v18 = vxor.u32 %v98_v10, %v94_v2  ;;  %v127_v31 = vmul.f32 1.5258789e-05, %v123_v12  ;;  %v139_v32 = vmul.f32 1.5258789e-05, %v135_v23 }
  0x2a   :  { %v103_v22 = vxor.u32 %v99_v14, %v95_v8  ;;  %v104_v29 = vxor.u32 %v100_v21, %v96_v13  ;;  %v128_v37 = vmul.f32 1.5258789e-05, %v124_v20  ;;  %v140_v38 = vmul.f32 1.5258789e-05, %v136_v24 }
  0x2b   :  { %v105_v25 = vmul.u32 2221713035, %v101_v17  ;;  %v106_v26 = vmul.u32 2221713035, %v102_v18  ;;  %v165_v41 = vadd.f32 %v137_v27, %v125_v11  ;;  %v166_v42 = vadd.f32 %v138_v28, %v126_v19 }
  0x2c   :  { %v107_v30 = vmul.u32 2221713035, %v103_v22  ;;  %v108_v35 = vmul.u32 2221713035, %v104_v29  ;;  %v167_v45 = vadd.f32 %v139_v32, %v127_v31  ;;  %v168_v53 = vadd.f32 %v140_v38, %v128_v37  ;;  %v186_v32 = vld [vmem:[#allocation3 + $0x8] sm:$0xff] }
  0x2d   :  { %v109_v33 = vshrl.u32 %v105_v25, 16  ;;  %v110_v34 = vshrl.u32 %v106_v26, 16 }
  0x2e   :  { %v111_v36 = vshrl.u32 %v107_v30, 16  ;;  %v112_v43 = vshrl.u32 %v108_v35, 16 }
  0x2f   :  { %v113_v39 = vxor.u32 %v109_v33, %v105_v25  ;;  %v114_v40 = vxor.u32 %v110_v34, %v106_v26  ;;  %v185_v26 = vld [vmem:[#allocation3] sm:$0xff] }
  0x30   :  { %v115_v44 = vxor.u32 %v111_v36, %v107_v30  ;;  %v116_v50 = vxor.u32 %v112_v43, %v108_v35 }
  0x31   :  { %v141_v46 = vand.u32 65535, %v113_v39  ;;  %v142_v47 = vand.u32 65535, %v114_v40  ;;  %v153_v48 = vshrl.u32 %v113_v39, 16  ;;  %v154_v49 = vshrl.u32 %v114_v40, 16 }
  0x32   :  { %v143_v51 = vand.u32 65535, %v115_v44  ;;  %v155_v52 = vshrl.u32 %v115_v44, 16  ;;  %v144_v58 = vand.u32 65535, %v116_v50  ;;  %v156_v60 = vshrl.u32 %v116_v50, 16 }
  0x33   :  { %v145_v54 = vcvt.s32.f32 %v141_v46  ;;  %v146_v55 = vcvt.s32.f32 %v142_v47  ;;  %v157_v56 = vcvt.s32.f32 %v153_v48  ;;  %v158_v57 = vcvt.s32.f32 %v154_v49 }
  0x34   :  { %v147_v59 = vcvt.s32.f32 %v143_v51  ;;  %v159_v61 = vcvt.s32.f32 %v155_v52  ;;  %v148_v2 = vcvt.s32.f32 %v144_v58  ;;  %v160_v4 = vcvt.s32.f32 %v156_v60 }
  0x35   :  { %v149_v62 = vmul.f32 1.5258789e-05, %v145_v54  ;;  %v150_v63 = vmul.f32 1.5258789e-05, %v146_v55  ;;  %v161_v0 = vmul.f32 1.5258789e-05, %v157_v56  ;;  %v162_v1 = vmul.f32 1.5258789e-05, %v158_v57 }
  0x36   :  { %v151_v3 = vmul.f32 1.5258789e-05, %v147_v59  ;;  %v163_v5 = vmul.f32 1.5258789e-05, %v159_v61  ;;  %v152_v8 = vmul.f32 1.5258789e-05, %v148_v2  ;;  %v164_v9 = vmul.f32 1.5258789e-05, %v160_v4 }
  0x37   :  { %v169_v6 = vadd.f32 %v165_v41, %v149_v62  ;;  %v170_v7 = vadd.f32 %v166_v42, %v150_v63 }
  0x38   :  { %v171_v10 = vadd.f32 %v167_v45, %v151_v3  ;;  %v172_v13 = vadd.f32 %v168_v53, %v152_v8 }
  0x39   :  { %v173_v11 = vadd.f32 %v169_v6, %v161_v0  ;;  %v174_v12 = vadd.f32 %v170_v7, %v162_v1 }
  0x3a   :  { %v175_v14 = vadd.f32 %v171_v10, %v163_v5  ;;  %v176_v17 = vadd.f32 %v172_v13, %v164_v9 }
  0x3b   :  { %v231_v15 = vadd.f32 -2.0, %v173_v11  ;;  %v232_v16 = vadd.f32 -2.0, %v174_v12 }
  0x3c   :  { %v233_v18 = vadd.f32 -2.0, %v175_v14  ;;  %v234_v21 = vadd.f32 -2.0, %v176_v17 }
  0x3d   :  { %v181_v19 = vmul.f32 1.7320508, %v231_v15  ;;  %v182_v20 = vmul.f32 1.7320508, %v232_v16 }
  0x3e   :  { %v183_v22 = vmul.f32 1.7320508, %v233_v18  ;;  %v184_v25 = vmul.f32 1.7320508, %v234_v21 }
  0x3f   :  { %v187_v23 = vmul.f32 0.1, %v181_v19  ;;  %v188_v24 = vmul.f32 0.1, %v182_v20 }
  0x40   :  { %v189_v28 = vmul.f32 0.1, %v183_v22  ;;  %v190_v29 = vmul.f32 0.1, %v184_v25 }
  0x41   :  { %v195_v27 = vrot.slane %v188_v24, 4 }
  0x42   :  { %v196_v33 = vrot.slane %v190_v29, 4 }
  0x43   :  { %v198_v30 = vsel %vm197_vm0, %v187_v23, %v195_v27 }
  0x44   :  { %v202_v31 = vadd.f32 %v198_v30, %v185_v26  ;;  %v199_v35 = vsel %vm197_vm0, %v189_v28, %v196_v33 }
  0x45   :  { %v203_v36 = vadd.f32 %v199_v35, %v186_v32 }
  0x46   :  { %v204_v34 = vmul.f32 2.0, %v202_v31 }
  0x47   :  { %v205_v38 = vmul.f32 2.0, %v203_v36 }
  0x48   :  { %v235_v37 = vclamps-f32 %v204_v34, 2.49 }
  0x49   :  { %v236_v41 = vclamps-f32 %v205_v38, 2.49 }
  0x4a   :  { %v239_v39 = vcvt.f32.s32 %v235_v37  ;;  %v237_v40 = vand.u32 2147483647, %v235_v37  ;;  %v242_v43 = vand.u32 2147483648, %v235_v37 }
  0x4b   :  { %v247_v44 = vcvt.f32.s32 %v236_v41  ;;  %v245_v46 = vand.u32 2147483647, %v236_v41  ;;  %v250_v48 = vand.u32 2147483648, %v236_v41 }
  0x4c   :  { %v240_v42 = vcvt.s32.f32 %v239_v39  ;;  %vm238_vm1 = vcmp.lt.f32.partialorder %v237_v40, 8388608.0 }
  0x4d   :  { %v248_v47 = vcvt.s32.f32 %v247_v44  ;;  %vm246_vm2 = vcmp.lt.f32.partialorder %v245_v46, 8388608.0 }
  0x4e   :  { %v241_v45 = vand.u32 2147483647, %v240_v42 }
  0x4f   :  { %v249_v50 = vand.u32 2147483647, %v248_v47 }
  0x50   :  { %v243_v49 = vor.u32 %v242_v43, %v241_v45 }
  0x51   :  { %v251_v52 = vor.u32 %v250_v48, %v249_v50 }
  0x52   :  { %v244_v51 = vsel %vm238_vm1, %v243_v49, %v235_v37 }
  0x53   :  { %212 = vst [vmem:[#allocation6] sm:$0xff] %v244_v51  ;;  %v252_v53 = vsel %vm246_vm2, %v251_v52, %v236_v41 }
  0x54   :  { %213 = vst [vmem:[#allocation6 + $0x8] sm:$0xff] %v252_v53 }
  0x55   :  { %224 = dma.vmem_to_hbm [thread:$0]  %s220_s1, 256, %s222_s19, [#allocation5]  }
  0x56   :  { %305 = dma.done.wait [#allocation5], 256  }
  0x57   :  { %306 = vsyncadd [#allocation5], 4294967040 }
  0x58   :  { %229 = vsyncpa [#allocation4], 1 }
  0x59   :  { %230 = vsyncpa [#allocation5], 1 }

</bundles_post_ra>
